<compile_context>
chip_gen: v6e
topology: v6e:2x2x1
jax: 0.10.0
libtpu: 0.0.40
codegen_flags: <defaults>
</compile_context>

<pallas_src>
import jax
import jax.numpy as jnp
from jax.experimental import pallas as pl
from jax.experimental.pallas import tpu as pltpu


# ----------------------------------------------------------------------------
# Kernel 1: bare Temperature.forward()  —  out = exp(temperature)
# ----------------------------------------------------------------------------
def _temperature_kernel(log_temp_ref, out_ref):
    # log_temp_ref, out_ref: (1, 1) f32 VMEM tiles.  Single EUP exp, no
    # broadcast, no scalar-core float exp.
    out_ref[...] = jnp.exp(log_temp_ref[...])


def _temperature_forward_impl(temperature_11: jax.Array) -> jax.Array:
    # temperature_11: (1, 1) f32 — passed straight through, no reshape plumbing.
    return pl.pallas_call(
        _temperature_kernel,
        out_shape=jax.ShapeDtypeStruct((1, 1), jnp.float32),
        in_specs=[pl.BlockSpec(memory_space=pltpu.VMEM)],
        out_specs=pl.BlockSpec(memory_space=pltpu.VMEM),
        cost_estimate=pl.CostEstimate(flops=0, transcendentals=1, bytes_accessed=8),
    )(temperature_11)


@jax.custom_vjp
def temperature_forward(temperature_11: jax.Array) -> jax.Array:
    """Pallas equivalent of Temperature.forward(): exp(temperature), as (1, 1)."""
    return _temperature_forward_impl(temperature_11)


def _temperature_fwd(temperature_11):
    y = _temperature_forward_impl(temperature_11)
    return y, y


def _temperature_bwd(y, g):
    # d/dx exp(x) = exp(x) = y.  Pure jnp — no pallas call in the backward graph.
    return (g * y,)


temperature_forward.defvjp(_temperature_fwd, _temperature_bwd)


# ----------------------------------------------------------------------------
# Kernel 2 (review item 2): consumer math folded into the same kernel body.
# SAC-style alpha loss:  loss = exp(log_alpha) * mean(stop_grad(entropy_diff))
# One pallas_call doing batch-sized VPU/EUP/XLU work so the dispatch cost
# amortizes over real vector work.
# ----------------------------------------------------------------------------
def _fused_alpha_loss_kernel(log_temp_ref, diff_ref, out_ref):
    alpha = jnp.exp(log_temp_ref[...])                        # (1, 1), EUP
    row = jnp.sum(diff_ref[...], axis=1, keepdims=True)       # (R, 1), lane reduce
    total = jnp.sum(row, axis=0, keepdims=True)               # (1, 1), sublane reduce
    inv_n = 1.0 / float(diff_ref.shape[0] * diff_ref.shape[1])
    out_ref[...] = alpha * total * inv_n


def fused_alpha_loss(temperature_11: jax.Array, entropy_diff: jax.Array) -> jax.Array:
    """exp(temperature) * mean(entropy_diff), computed in a single pallas_call."""
    # TODO(synk): for training, wire a custom_vjp (d loss / d log_alpha = loss);
    # entropy_diff is stop-gradded in SAC so only the scalar grad is needed.
    n = entropy_diff.size
    out = pl.pallas_call(
        _fused_alpha_loss_kernel,
        out_shape=jax.ShapeDtypeStruct((1, 1), jnp.float32),
        in_specs=[
            pl.BlockSpec(memory_space=pltpu.VMEM),
            pl.BlockSpec(memory_space=pltpu.VMEM),
        ],
        out_specs=pl.BlockSpec(memory_space=pltpu.VMEM),
        cost_estimate=pl.CostEstimate(
            flops=2 * n + 2, transcendentals=1, bytes_accessed=4 * n + 8
        ),
    )(temperature_11, entropy_diff)
    return out[0, 0]


# ----------------------------------------------------------------------------
# Module wrapper (matches the PyTorch module's interface)
# ----------------------------------------------------------------------------
class Temperature:
    """JAX counterpart of the PyTorch module (deterministic init)."""

    def __init__(self, init_temperature: float):
        # nn.Parameter(torch.tensor(init_temperature)) -> 0-d f32 parameter.
        # Stored here as (1, 1) f32 so it feeds the kernel with zero reshape ops.
        self.temperature = jnp.full((1, 1), init_temperature, dtype=jnp.float32)

    def __call__(self) -> jax.Array:
        # forward(): temperature.exp(), returned as a 0-d scalar like torch.
        return temperature_forward(self.temperature)[0, 0]


if __name__ == "__main__":
    key = jax.random.PRNGKey(0)

    init_temperature = 1.0
    module = Temperature(init_temperature)

    # --- forward: exp(temperature) ---------------------------------------
    out = jax.block_until_ready(module())
    expected = jnp.exp(jnp.float32(init_temperature))
    assert out.shape == ()
    assert out.dtype == jnp.float32
    assert jnp.allclose(out, expected, rtol=1e-6, atol=1e-6)

    # --- backward: the parameter is learnable (d/dx exp(x) = exp(x)) ------
    grad = jax.block_until_ready(
        jax.grad(lambda t: temperature_forward(t)[0, 0])(module.temperature)
    )
    assert grad.shape == (1, 1)
    assert jnp.allclose(grad[0, 0], expected, rtol=1e-6, atol=1e-6)

    # --- fused consumer math (review item 2): alpha loss over a batch -----
    entropy_diff = jax.random.normal(key, (8, 128), dtype=jnp.float32)
    loss = jax.block_until_ready(fused_alpha_loss(module.temperature, entropy_diff))
    loss_ref = jnp.exp(jnp.float32(init_temperature)) * jnp.mean(entropy_diff)
    assert loss.shape == ()
    assert jnp.allclose(loss, loss_ref, rtol=1e-5, atol=1e-5)

    print("KERNEL_OK")
</pallas_src>

<mosaic_0001>
module attributes {stable_mosaic.version = 11 : i64} {
  func.func @_temperature_kernel(%arg0: memref<1x1xf32, #tpu.memory_space<vmem>>, %arg1: memref<1x1xf32, #tpu.memory_space<vmem>>) attributes {dimension_semantics = [], scalar_prefetch = 0 : i64, scratch_operands = 0 : i64, tpu.core_type = #tpu.core_type<tc>} {
    %c0 = arith.constant 0 : index
    %c0_0 = arith.constant 0 : index
    %0 = vector.load %arg0[%c0, %c0_0] : memref<1x1xf32, #tpu.memory_space<vmem>>, vector<1x1xf32>
    %1 = math.exp %0 : vector<1x1xf32>
    %c0_1 = arith.constant 0 : index
    %c0_2 = arith.constant 0 : index
    %2 = vector.load %arg1[%c0_1, %c0_2] : memref<1x1xf32, #tpu.memory_space<vmem>>, vector<1x1xf32>
    tpu.vector_store %arg1[%c0_1, %c0_2], %1 {strides = array<i32>} : memref<1x1xf32, #tpu.memory_space<vmem>>, vector<1x1xf32>,
    return
  }
}

</mosaic_0001>

<bundles_post_ra>
// kernel: tpu_custom_call.1
= control target key start
LH: loop header
LB: loop body
LE: loop exit
PB: predicated region body
PF: predicated region fallthrough
CT: control target
= control target key end

     0   :  { %s72_s0 = inlined_call_operand.<no memory space> [shape: f32[1,1], index: 0, kind: input, shape index: {}]   ;;  %s73_s1 = inlined_call_operand.hbm [shape: f32[1,1], index: 1, kind: output, shape index: {}]  }
   0x1   :  { %v6_v0 = vstv %s72_s0 }
   0x2   :  { %7 = vst [vmem:[#allocation2] sm:$0x1] %v6_v0 }
   0x9   :  { %v11_v1 = vld [vmem:[#allocation2] sm:$0x1] }
   0xa   :  { %8 = vsyncpa [#allocation4], 0  ;;  %v12_v2 = vmul.f32 1.442695, %v11_v1  ;;  %s55_s8 = smov [#allocation3]   ;;  %vm14_vm0 = vcmask 0  }
   0xb   :  { %s22_s9 = sshll.u32 %s55_s8, 4  ;;  %s23_s9 = int_to_ptr.vmem [resolvable:$true] %s22_s9 }
   0xc   :  { %31 = vpow2.f32 %v12_v2  ;;  %s33_s10 = scalar_lea.vmem %s23_s9, 16  ;;  %s37_s11 = scalar_lea.vmem %s23_s9, 32 }
   0xd   :  { %p34_p0 = scmp.ne.s32.totalorder %s23_s9, %s33_s10  ;;  %p38_p1 = scmp.lt.s32.totalorder %s23_s9, %s23_s9 }
   0xe   :  { %p39_p2 = scmp.lt.s32.totalorder %s37_s11, %s33_s10 }
  0x10   :  { %p40_p3 = por %p39_p2, %p38_p1 }
  0x12   :  { %p41_p4 = pnand %p40_p3, %p34_p0 }
  0x19   :  { %v32_v3 = vpop.eup %31 }
  0x1a   :  { %15 = vst.msk [vmem:[#allocation3] sm:$0x1] %vm14_vm0, %v32_v3 }
  0x1b   :  { %44 = shalt.err (!%p41_p4)
}
  0x1c   :  { %25 = dma.vmem_to_hbm [thread:$0]  %s23_s9, 16, %s73_s1, [#allocation4]  }
  0x1d   :  { %53 = dma.done.wait [#allocation4], 16  }
  0x1e   :  { %54 = vsyncadd [#allocation4], 4294967280 }
  0x1f   :  { %29 = vsyncpa [#allocation4], 1 }

</bundles_post_ra>
